<compile_context>
chip_gen: v5e
topology: v5e:2x2
jax: 0.10.0
libtpu: 0.0.40
codegen_flags: <defaults>
</compile_context>

<pallas_src>
import jax
import jax.numpy as jnp
from jax.experimental import pallas as pl
from jax.experimental.pallas import tpu as pltpu


# ----------------------------------------------------------------------------
# Kernel 1: std = exp(log_std) on its natural (1, A) tile.  O(A) work.
# ----------------------------------------------------------------------------
def _std_row_kernel(log_std_ref, std_ref):
    std_ref[...] = jnp.exp(log_std_ref[...])          # EUP exp on one row


def ppo_std(log_std):
    """exp(log_std), shape (1, A). Single full-array block, no grid needed."""
    return pl.pallas_call(
        _std_row_kernel,
        out_shape=jax.ShapeDtypeStruct(log_std.shape, log_std.dtype),
    )(log_std)


def ppo_forward(mu, log_std):
    """Pallas-backed PPO.forward.

    Returns (loc, scale_row):
      loc       = mu                 (pass-through, no kernel / no HBM traffic)
      scale_row = exp(log_std), (1, A)
    The Normal distribution is Normal(loc, broadcast(scale_row, mu.shape)) —
    identical semantics to torch's expand_as (which is itself a stride-0 view).
    """
    return mu, ppo_std(log_std)


# ----------------------------------------------------------------------------
# Kernel 2 (optional): materialize a dense (B, A) scale, lane-dense & tiled.
# ----------------------------------------------------------------------------
def _scale_dense_kernel(std_ref, scale_ref):
    # std_ref:   (1, L)      exp(log_std) already laid out for the output lanes
    # scale_ref: (TILE_R, L) lane-dense whenever the shape allows (L == 128)
    # The broadcast source is a single replicated vreg row; the store dominates.
    scale_ref[...] = jnp.broadcast_to(std_ref[...], scale_ref.shape)


def materialize_scale(std_row, batch, *, tile_rows=1024):
    """Dense (batch, A) scale tensor for consumers that need one materialized."""
    _, A = std_row.shape
    B = batch

    if (B * A) % 128 == 0 and 128 % A == 0:
        # Row-major view of (B, A) as (B*A/128, 128): unmasked 128-wide stores.
        lane = 128
        rows = (B * A) // 128
        std_lane = jnp.tile(std_row, (1, 128 // A))    # (1, 128), tiny XLA op
    else:
        lane = A
        rows = B
        std_lane = std_row

    # tile_r is either the full row count or a multiple of 8 (1024), so the
    # (8, 128) BlockSpec constraint is always satisfied.
    tile_r = min(rows, tile_rows)
    grid = (pl.cdiv(rows, tile_r),)

    dense = pl.pallas_call(
        _scale_dense_kernel,
        out_shape=jax.ShapeDtypeStruct((rows, lane), std_row.dtype),
        grid=grid,
        in_specs=[pl.BlockSpec((1, lane), lambda i: (0, 0))],
        out_specs=pl.BlockSpec((tile_r, lane), lambda i: (i, 0)),
        compiler_params=pltpu.CompilerParams(
            # Row tiles are independent: shard across the 2 TCs on v7x.
            dimension_semantics=("parallel",),
        ),
    )(std_lane)
    return dense.reshape(B, A)


# ----------------------------------------------------------------------------
if __name__ == "__main__":
    key = jax.random.PRNGKey(0)
    k_mu, k_ls, k_mu2 = jax.random.split(key, 3)

    batch, action_size = 2, 32

    # Parameter init matches nn.Parameter(torch.zeros(1, action_size)).
    log_std = jnp.zeros((1, action_size), dtype=jnp.float32)
    mu = jax.random.normal(k_mu, (batch, action_size), dtype=jnp.float32)

    loc, scale_row = ppo_forward(mu, log_std)
    scale_dense = materialize_scale(scale_row, batch)
    jax.block_until_ready((loc, scale_row, scale_dense))

    ref_scale = jnp.broadcast_to(jnp.exp(log_std), mu.shape)
    assert jnp.allclose(loc, mu, atol=1e-6, rtol=1e-6)
    assert jnp.allclose(jnp.broadcast_to(scale_row, mu.shape), ref_scale,
                        atol=1e-6, rtol=1e-6)
    assert jnp.allclose(scale_dense, ref_scale, atol=1e-6, rtol=1e-6)

    # Second check: non-zero log_std + a batch hitting the lane-dense path
    # (8 * 32 = 256 elements -> (2, 128) lane-dense output rows).
    batch2 = 8
    log_std2 = 0.1 * jax.random.normal(k_ls, (1, action_size), dtype=jnp.float32)
    mu2 = jax.random.normal(k_mu2, (batch2, action_size), dtype=jnp.float32)

    loc2, scale_row2 = ppo_forward(mu2, log_std2)
    scale_dense2 = materialize_scale(scale_row2, batch2)
    jax.block_until_ready((loc2, scale_row2, scale_dense2))

    ref_scale2 = jnp.broadcast_to(jnp.exp(log_std2), mu2.shape)
    assert jnp.allclose(loc2, mu2, atol=1e-6, rtol=1e-6)
    assert jnp.allclose(jnp.broadcast_to(scale_row2, mu2.shape), ref_scale2,
                        atol=1e-6, rtol=1e-6)
    assert jnp.allclose(scale_dense2, ref_scale2, atol=1e-6, rtol=1e-6)

    print("KERNEL_OK")
</pallas_src>

<mosaic_0001>
module attributes {stable_mosaic.version = 11 : i64} {
  func.func @_std_row_kernel(%arg0: memref<1x32xf32, #tpu.memory_space<vmem>>, %arg1: memref<1x32xf32, #tpu.memory_space<vmem>>) attributes {dimension_semantics = [], scalar_prefetch = 0 : i64, scratch_operands = 0 : i64, tpu.core_type = #tpu.core_type<tc>} {
    %c0 = arith.constant 0 : index
    %c0_0 = arith.constant 0 : index
    %0 = vector.load %arg0[%c0, %c0_0] : memref<1x32xf32, #tpu.memory_space<vmem>>, vector<1x32xf32>
    %1 = math.exp %0 : vector<1x32xf32>
    %c0_1 = arith.constant 0 : index
    %c0_2 = arith.constant 0 : index
    %2 = vector.load %arg1[%c0_1, %c0_2] : memref<1x32xf32, #tpu.memory_space<vmem>>, vector<1x32xf32>
    tpu.vector_store %arg1[%c0_1, %c0_2], %1 {strides = array<i32>} : memref<1x32xf32, #tpu.memory_space<vmem>>, vector<1x32xf32>,
    return
  }
}

</mosaic_0001>

<bundles_post_ra>
// kernel: tpu_custom_call.1
= control target key start
LH: loop header
LB: loop body
LE: loop exit
PB: predicated region body
PF: predicated region fallthrough
CT: control target
= control target key end

     0   :  { %6 = vsyncpa [#allocation3], 0  ;;  %s119_s0 = inlined_call_operand.hbm [shape: f32[1,32], index: 0, kind: input, shape index: {}]   ;;  %s120_s1 = inlined_call_operand.hbm [shape: f32[1,32], index: 1, kind: output, shape index: {}]  }
   0x1   :  { %7 = vsyncpa [#allocation4], 0  ;;  %s13_s8 = sshll.u32 %s119_s0, 4  ;;  %s101_s9 = smov [#allocation2]   ;;  %s14_s8 = int_to_ptr.hbm [resolvable:$true] %s13_s8 }
   0x2   :  { %s15_s10 = sshll.u32 %s101_s9, 4  ;;  %s16_s10 = int_to_ptr.vmem [resolvable:$true] %s15_s10 }
   0x3   :  { %18 = dma.hbm_to_vmem [thread:$0]  %s14_s8, 16, %s16_s10, [#allocation3]  }
   0x4   :  { %97 = dma.done.wait [#allocation3], 16  }
   0x5   :  { %98 = vsyncadd [#allocation3], 4294967280  ;;  %v23_v0 = vld [vmem:[#allocation2] sm:$0x1]  ;;  %s102_s11 = smov [#allocation5]   ;;  %s35_s15 = sshll.u32 %s120_s1, 4  ;;  %s36_s15 = int_to_ptr.hbm [resolvable:$true] %s35_s15 }
   0x6   :  { %v24_v1 = vmul.f32 1.442695, %v23_v0  ;;  %s33_s12 = sshll.u32 %s102_s11, 4  ;;  %vm26_vm0 = vcmask 253952   ;;  %s34_s12 = int_to_ptr.vmem [resolvable:$true] %s33_s12 }
   0x8   :  { %47 = vpow2.f32 %v24_v1 }
   0xe   :  { %v48_v2 = vpop.eup %47 }
   0xf   :  { %27 = vst.msk [vmem:[#allocation5] sm:$0x1] %vm26_vm0, %v48_v2 }
  0x10   :  { %38 = dma.vmem_to_hbm [thread:$0]  %s34_s12, 16, %s36_s15, [#allocation4]  }
  0x11   :  { %99 = dma.done.wait [#allocation4], 16  }
  0x12   :  { %100 = vsyncadd [#allocation4], 4294967280 }
  0x13   :  { %43 = vsyncpa [#allocation3], 1 }
  0x14   :  { %44 = vsyncpa [#allocation4], 1 }

</bundles_post_ra>
